<compile_context>
chip_gen: v7x
topology: tpu7x:2x2x1
jax: 0.10.0
libtpu: 0.0.40
codegen_flags: <defaults>
</compile_context>

<pallas_src>
import functools

import jax
import jax.numpy as jnp
from jax.experimental import pallas as pl
from jax.experimental.pallas import tpu as pltpu

_LANE = 128
_SUBLANE = 8


def _round_up(v, m):
    return ((v + m - 1) // m) * m


def _autoencoder_kernel(x_ref,
                        w1_ref, b1_ref,
                        w2_ref, b2_ref,
                        w3_ref, b3_ref,
                        w4_ref, b4_ref,
                        out_ref):
    cd = w1_ref.dtype            # bf16 matmul inputs
    x = x_ref[...]               # (block_b, Dp) bf16

    # encoder: Linear(D, 2H) -> ReLU -> Linear(2H, H)   (f32 accumulate / epilogue)
    h1 = jnp.dot(x, w1_ref[...], preferred_element_type=jnp.float32) + b1_ref[...]
    h1 = jnp.maximum(h1, 0.0)
    enc = jnp.dot(h1.astype(cd), w2_ref[...],
                  preferred_element_type=jnp.float32) + b2_ref[...]

    # decoder: Linear(H, 2H) -> ReLU -> Linear(2H, D) -> Sigmoid
    h2 = jnp.dot(enc.astype(cd), w3_ref[...],
                 preferred_element_type=jnp.float32) + b3_ref[...]
    h2 = jnp.maximum(h2, 0.0)
    dec = jnp.dot(h2.astype(cd), w4_ref[...],
                  preferred_element_type=jnp.float32) + b4_ref[...]

    # sigmoid(x) = 1 / (1 + exp(-x)): exp on the EUP, approx reciprocal (no divide).
    out_ref[...] = pl.reciprocal(1.0 + jnp.exp(-dec), approx=True).astype(out_ref.dtype)


@functools.partial(jax.jit, static_argnames=("block_b", "compute_dtype"))
def simple_autoencoder_forward(x, params, block_b=256, compute_dtype=jnp.bfloat16):
    """x: (B, input_dim) float32. params: pre-transposed weights (in, out) + (1, out) biases."""
    B, D = x.shape
    H2 = params["w1"].shape[1]     # hidden_dim * 2
    H = params["w2"].shape[1]      # hidden_dim

    # Lane-dense (multiple-of-128) padded feature dims.
    Dp = _round_up(D, _LANE)
    H2p = _round_up(H2, _LANE)
    Hp = _round_up(H, _LANE)

    # Batch tile: multiple of 8 sublanes, capped for small batches; pad B so the
    # grid is exact (no dropped trailing rows).
    block_b = max(_SUBLANE, _round_up(block_b, _SUBLANE))
    block_b = min(block_b, _round_up(B, _SUBLANE))
    Bp = _round_up(B, block_b)

    def pad2(a, rows, cols, dtype):
        return jnp.pad(a, ((0, rows - a.shape[0]), (0, cols - a.shape[1]))).astype(dtype)

    xp = pad2(x, Bp, Dp, compute_dtype)
    w1 = pad2(params["w1"], D, H2p, compute_dtype)[:Dp] if False else pad2(params["w1"], Dp, H2p, compute_dtype)
    b1 = pad2(params["b1"], 1, H2p, jnp.float32)
    w2 = pad2(params["w2"], H2p, Hp, compute_dtype)
    b2 = pad2(params["b2"], 1, Hp, jnp.float32)
    w3 = pad2(params["w3"], Hp, H2p, compute_dtype)
    b3 = pad2(params["b3"], 1, H2p, jnp.float32)
    w4 = pad2(params["w4"], H2p, Dp, compute_dtype)
    b4 = pad2(params["b4"], 1, Dp, jnp.float32)

    grid = (pl.cdiv(Bp, block_b),)
    # Weights / biases: whole-array blocks, constant index -> fetched once.
    full = lambda arr: pl.BlockSpec(arr.shape, lambda i: (0,) * arr.ndim)

    out = pl.pallas_call(
        _autoencoder_kernel,
        out_shape=jax.ShapeDtypeStruct((Bp, Dp), jnp.float32),
        grid_spec=pltpu.PrefetchScalarGridSpec(
            num_scalar_prefetch=0,
            grid=grid,
            in_specs=[
                pl.BlockSpec((block_b, Dp), lambda i: (i, 0)),
                full(w1), full(b1),
                full(w2), full(b2),
                full(w3), full(b3),
                full(w4), full(b4),
            ],
            out_specs=pl.BlockSpec((block_b, Dp), lambda i: (i, 0)),
        ),
        compiler_params=pltpu.CompilerParams(
            dimension_semantics=("parallel",),
            vmem_limit_bytes=48 * 1024 * 1024,
        ),
    )(xp, w1, b1, w2, b2, w3, b3, w4, b4)

    return out[:B, :D]


def init_params(key, input_dim, hidden_dim):
    """Deterministic synthetic params shaped like the PyTorch module (pre-transposed)."""
    ks = jax.random.split(key, 8)
    h2 = hidden_dim * 2

    def lin(kw, kb, fan_in, fan_out):
        bound = 1.0 / jnp.sqrt(fan_in)
        w = jax.random.uniform(kw, (fan_in, fan_out), jnp.float32, -bound, bound)
        b = jax.random.uniform(kb, (1, fan_out), jnp.float32, -bound, bound)
        return w, b

    w1, b1 = lin(ks[0], ks[1], input_dim, h2)
    w2, b2 = lin(ks[2], ks[3], h2, hidden_dim)
    w3, b3 = lin(ks[4], ks[5], hidden_dim, h2)
    w4, b4 = lin(ks[6], ks[7], h2, input_dim)
    return {"w1": w1, "b1": b1, "w2": w2, "b2": b2,
            "w3": w3, "b3": b3, "w4": w4, "b4": b4}


def reference_forward_f32(x, p):
    h1 = jnp.maximum(x @ p["w1"] + p["b1"], 0.0)
    enc = h1 @ p["w2"] + p["b2"]
    h2 = jnp.maximum(enc @ p["w3"] + p["b3"], 0.0)
    dec = h2 @ p["w4"] + p["b4"]
    return jax.nn.sigmoid(dec)


def reference_forward_bf16(x, p):
    """Same bf16-matmul / f32-accumulate numerics as the kernel, exact sigmoid."""
    cd = jnp.bfloat16
    mm = lambda a, w: jnp.dot(a.astype(cd), w.astype(cd),
                              preferred_element_type=jnp.float32)
    h1 = jnp.maximum(mm(x, p["w1"]) + p["b1"], 0.0)
    enc = mm(h1, p["w2"]) + p["b2"]
    h2 = jnp.maximum(mm(enc, p["w3"]) + p["b3"], 0.0)
    dec = mm(h2, p["w4"]) + p["b4"]
    return jax.nn.sigmoid(dec)


if __name__ == "__main__":
    key = jax.random.PRNGKey(0)
    k_x, k_p = jax.random.split(key)

    # Small demo shapes; batch=13 deliberately not a multiple of the tile to
    # exercise the cdiv/padding path, block_b=8 -> grid=(2,) so both v7x TCs work.
    batch, input_dim, hidden_dim = 13, 64, 32
    x = jax.random.uniform(k_x, (batch, input_dim), jnp.float32)
    params = init_params(k_p, input_dim, hidden_dim)

    out = simple_autoencoder_forward(x, params, block_b=8)
    out = jax.block_until_ready(out)

    assert out.shape == (batch, input_dim)
    assert bool(jnp.all(jnp.isfinite(out)))
    assert bool(jnp.all((out >= 0.0) & (out <= 1.0)))

    ref_match = reference_forward_bf16(x, params)   # matched bf16-matmul numerics
    ref_f32 = reference_forward_f32(x, params)      # original f32 module semantics
    assert jnp.allclose(out, ref_match, atol=5e-3, rtol=5e-3), \
        "Pallas output mismatch vs bf16-matched reference"
    assert jnp.allclose(out, ref_f32, atol=2e-2, rtol=2e-2), \
        "Pallas output mismatch vs f32 reference"

    print("KERNEL_OK")
</pallas_src>

<mosaic_0001>
module attributes {stable_mosaic.version = 11 : i64} {
  func.func @_autoencoder_kernel(%arg0: i32, %arg1: memref<8x128xbf16, #tpu.memory_space<vmem>>, %arg2: memref<128x128xbf16, #tpu.memory_space<vmem>>, %arg3: memref<1x128xf32, #tpu.memory_space<vmem>>, %arg4: memref<128x128xbf16, #tpu.memory_space<vmem>>, %arg5: memref<1x128xf32, #tpu.memory_space<vmem>>, %arg6: memref<128x128xbf16, #tpu.memory_space<vmem>>, %arg7: memref<1x128xf32, #tpu.memory_space<vmem>>, %arg8: memref<128x128xbf16, #tpu.memory_space<vmem>>, %arg9: memref<1x128xf32, #tpu.memory_space<vmem>>, %arg10: memref<8x128xf32, #tpu.memory_space<vmem>>) attributes {dimension_semantics = [#tpu.dimension_semantics<parallel>], iteration_bounds = array<i64: 2>, scalar_prefetch = 0 : i64, scratch_operands = 0 : i64, tpu.core_type = #tpu.core_type<tc>, window_params = [{transform_indices = @transform_0, window_bounds = array<i64: 8, 128>}, {pipeline_mode = #tpu.pipeline_mode<synchronous>, transform_indices = @transform_1, window_bounds = array<i64: 128, 128>}, {pipeline_mode = #tpu.pipeline_mode<synchronous>, transform_indices = @transform_2, window_bounds = array<i64: 1, 128>}, {pipeline_mode = #tpu.pipeline_mode<synchronous>, transform_indices = @transform_3, window_bounds = array<i64: 128, 128>}, {pipeline_mode = #tpu.pipeline_mode<synchronous>, transform_indices = @transform_4, window_bounds = array<i64: 1, 128>}, {pipeline_mode = #tpu.pipeline_mode<synchronous>, transform_indices = @transform_5, window_bounds = array<i64: 128, 128>}, {pipeline_mode = #tpu.pipeline_mode<synchronous>, transform_indices = @transform_6, window_bounds = array<i64: 1, 128>}, {pipeline_mode = #tpu.pipeline_mode<synchronous>, transform_indices = @transform_7, window_bounds = array<i64: 128, 128>}, {pipeline_mode = #tpu.pipeline_mode<synchronous>, transform_indices = @transform_8, window_bounds = array<i64: 1, 128>}, {transform_indices = @transform_9, window_bounds = array<i64: 8, 128>}]} {
    %c0 = arith.constant 0 : index
    %c0_0 = arith.constant 0 : index
    %0 = vector.load %arg1[%c0, %c0_0] : memref<8x128xbf16, #tpu.memory_space<vmem>>, vector<8x128xbf16>
    %c0_1 = arith.constant 0 : index
    %c0_2 = arith.constant 0 : index
    %1 = vector.load %arg2[%c0_1, %c0_2] : memref<128x128xbf16, #tpu.memory_space<vmem>>, vector<128x128xbf16>
    %cst = arith.constant dense<0.000000e+00> : vector<8x128xf32>
    %2 = tpu.matmul %0, %1, %cst {dimension_numbers = #tpu.dot_dimension_numbers<[1], [0], [0], [1], [0, 0, 1, 1], [], []>} : vector<8x128xbf16>, vector<128x128xbf16>, vector<8x128xf32> -> vector<8x128xf32>
    %c0_3 = arith.constant 0 : index
    %c0_4 = arith.constant 0 : index
    %3 = vector.load %arg3[%c0_3, %c0_4] : memref<1x128xf32, #tpu.memory_space<vmem>>, vector<1x128xf32>
    %4 = vector.broadcast %3 : vector<1x128xf32> to vector<8x128xf32>
    %5 = arith.addf %2, %4 : vector<8x128xf32>
    %cst_5 = arith.constant 0.000000e+00 : f32
    %6 = vector.broadcast %cst_5 : f32 to vector<8x128xf32>
    %7 = arith.maximumf %5, %6 : vector<8x128xf32>
    %8 = arith.truncf %7 : vector<8x128xf32> to vector<8x128xbf16>
    %c0_6 = arith.constant 0 : index
    %c0_7 = arith.constant 0 : index
    %9 = vector.load %arg4[%c0_6, %c0_7] : memref<128x128xbf16, #tpu.memory_space<vmem>>, vector<128x128xbf16>
    %cst_8 = arith.constant dense<0.000000e+00> : vector<8x128xf32>
    %10 = tpu.matmul %8, %9, %cst_8 {dimension_numbers = #tpu.dot_dimension_numbers<[1], [0], [0], [1], [0, 0, 1, 1], [], []>} : vector<8x128xbf16>, vector<128x128xbf16>, vector<8x128xf32> -> vector<8x128xf32>
    %c0_9 = arith.constant 0 : index
    %c0_10 = arith.constant 0 : index
    %11 = vector.load %arg5[%c0_9, %c0_10] : memref<1x128xf32, #tpu.memory_space<vmem>>, vector<1x128xf32>
    %12 = vector.broadcast %11 : vector<1x128xf32> to vector<8x128xf32>
    %13 = arith.addf %10, %12 : vector<8x128xf32>
    %14 = arith.truncf %13 : vector<8x128xf32> to vector<8x128xbf16>
    %c0_11 = arith.constant 0 : index
    %c0_12 = arith.constant 0 : index
    %15 = vector.load %arg6[%c0_11, %c0_12] : memref<128x128xbf16, #tpu.memory_space<vmem>>, vector<128x128xbf16>
    %cst_13 = arith.constant dense<0.000000e+00> : vector<8x128xf32>
    %16 = tpu.matmul %14, %15, %cst_13 {dimension_numbers = #tpu.dot_dimension_numbers<[1], [0], [0], [1], [0, 0, 1, 1], [], []>} : vector<8x128xbf16>, vector<128x128xbf16>, vector<8x128xf32> -> vector<8x128xf32>
    %c0_14 = arith.constant 0 : index
    %c0_15 = arith.constant 0 : index
    %17 = vector.load %arg7[%c0_14, %c0_15] : memref<1x128xf32, #tpu.memory_space<vmem>>, vector<1x128xf32>
    %18 = vector.broadcast %17 : vector<1x128xf32> to vector<8x128xf32>
    %19 = arith.addf %16, %18 : vector<8x128xf32>
    %cst_16 = arith.constant 0.000000e+00 : f32
    %20 = vector.broadcast %cst_16 : f32 to vector<8x128xf32>
    %21 = arith.maximumf %19, %20 : vector<8x128xf32>
    %22 = arith.truncf %21 : vector<8x128xf32> to vector<8x128xbf16>
    %c0_17 = arith.constant 0 : index
    %c0_18 = arith.constant 0 : index
    %23 = vector.load %arg8[%c0_17, %c0_18] : memref<128x128xbf16, #tpu.memory_space<vmem>>, vector<128x128xbf16>
    %cst_19 = arith.constant dense<0.000000e+00> : vector<8x128xf32>
    %24 = tpu.matmul %22, %23, %cst_19 {dimension_numbers = #tpu.dot_dimension_numbers<[1], [0], [0], [1], [0, 0, 1, 1], [], []>} : vector<8x128xbf16>, vector<128x128xbf16>, vector<8x128xf32> -> vector<8x128xf32>
    %c0_20 = arith.constant 0 : index
    %c0_21 = arith.constant 0 : index
    %25 = vector.load %arg9[%c0_20, %c0_21] : memref<1x128xf32, #tpu.memory_space<vmem>>, vector<1x128xf32>
    %26 = vector.broadcast %25 : vector<1x128xf32> to vector<8x128xf32>
    %27 = arith.addf %24, %26 : vector<8x128xf32>
    %cst_22 = arith.constant 0.000000e+00 : f32
    %28 = vector.broadcast %cst_22 : f32 to vector<8x128xf32>
    %29 = arith.subf %28, %27 : vector<8x128xf32>
    %30 = math.exp %29 : vector<8x128xf32>
    %cst_23 = arith.constant 1.000000e+00 : f32
    %31 = vector.broadcast %cst_23 : f32 to vector<8x128xf32>
    %32 = arith.addf %31, %30 : vector<8x128xf32>
    %33 = tpu.reciprocal %32 {approx = true} : vector<8x128xf32> -> vector<8x128xf32>
    %c0_24 = arith.constant 0 : index
    %c0_25 = arith.constant 0 : index
    %34 = vector.load %arg10[%c0_24, %c0_25] : memref<8x128xf32, #tpu.memory_space<vmem>>, vector<8x128xf32>
    tpu.vector_store %arg10[%c0_24, %c0_25], %33 {strides = array<i32>} : memref<8x128xf32, #tpu.memory_space<vmem>>, vector<8x128xf32>,
    return
  }
  func.func @transform_0(%arg0: i32) -> (i32, i32) {
    %c0_i32 = arith.constant 0 : i32
    %c0_i32_0 = arith.constant 0 : i32
    return %arg0, %c0_i32 : i32, i32
  }
  func.func @transform_1(%arg0: i32) -> (i32, i32) {
    %c0_i32 = arith.constant 0 : i32
    %c0_i32_0 = arith.constant 0 : i32
    %c0_i32_1 = arith.constant 0 : i32
    return %c0_i32, %c0_i32_0 : i32, i32
  }
  func.func @transform_2(%arg0: i32) -> (i32, i32) {
    %c0_i32 = arith.constant 0 : i32
    %c0_i32_0 = arith.constant 0 : i32
    %c0_i32_1 = arith.constant 0 : i32
    return %c0_i32, %c0_i32_0 : i32, i32
  }
  func.func @transform_3(%arg0: i32) -> (i32, i32) {
    %c0_i32 = arith.constant 0 : i32
    %c0_i32_0 = arith.constant 0 : i32
    %c0_i32_1 = arith.constant 0 : i32
    return %c0_i32, %c0_i32_0 : i32, i32
  }
  func.func @transform_4(%arg0: i32) -> (i32, i32) {
    %c0_i32 = arith.constant 0 : i32
    %c0_i32_0 = arith.constant 0 : i32
    %c0_i32_1 = arith.constant 0 : i32
    return %c0_i32, %c0_i32_0 : i32, i32
  }
  func.func @transform_5(%arg0: i32) -> (i32, i32) {
    %c0_i32 = arith.constant 0 : i32
    %c0_i32_0 = arith.constant 0 : i32
    %c0_i32_1 = arith.constant 0 : i32
    return %c0_i32, %c0_i32_0 : i32, i32
  }
  func.func @transform_6(%arg0: i32) -> (i32, i32) {
    %c0_i32 = arith.constant 0 : i32
    %c0_i32_0 = arith.constant 0 : i32
    %c0_i32_1 = arith.constant 0 : i32
    return %c0_i32, %c0_i32_0 : i32, i32
  }
  func.func @transform_7(%arg0: i32) -> (i32, i32) {
    %c0_i32 = arith.constant 0 : i32
    %c0_i32_0 = arith.constant 0 : i32
    %c0_i32_1 = arith.constant 0 : i32
    return %c0_i32, %c0_i32_0 : i32, i32
  }
  func.func @transform_8(%arg0: i32) -> (i32, i32) {
    %c0_i32 = arith.constant 0 : i32
    %c0_i32_0 = arith.constant 0 : i32
    %c0_i32_1 = arith.constant 0 : i32
    return %c0_i32, %c0_i32_0 : i32, i32
  }
  func.func @transform_9(%arg0: i32) -> (i32, i32) {
    %c0_i32 = arith.constant 0 : i32
    %c0_i32_0 = arith.constant 0 : i32
    return %arg0, %c0_i32 : i32, i32
  }
}

</mosaic_0001>

<bundles_post_ra>
// kernel: simple_autoencoder_forward.1
= control target key start
LH: loop header
LB: loop body
LE: loop exit
PB: predicated region body
PF: predicated region fallthrough
CT: control target
= control target key end

     0   :  { %14 = vsyncpa [#allocation3], 0  ;;  %s1462_s0 = inlined_call_operand.vmem [shape: bf16[16,128], index: 0, kind: input, shape index: {}]   ;;  %s1463_s1 = inlined_call_operand.vmem [shape: bf16[128,128], index: 1, kind: input, shape index: {}]   ;;  %s1464_s2 = inlined_call_operand.vmem [shape: f32[1,128], index: 2, kind: input, shape index: {}]   ;;  %s1465_s3 = inlined_call_operand.vmem [shape: bf16[128,128], index: 3, kind: input, shape index: {}]   ;;  %s1466_s4 = inlined_call_operand.vmem [shape: f32[1,128], index: 4, kind: input, shape index: {}]   ;;  %s1467_s5 = inlined_call_operand.vmem [shape: bf16[128,128], index: 5, kind: input, shape index: {}]   ;;  %s1468_s6 = inlined_call_operand.vmem [shape: f32[1,128], index: 6, kind: input, shape index: {}]   ;;  %s1469_s7 = inlined_call_operand.vmem [shape: bf16[128,128], index: 7, kind: input, shape index: {}]   ;;  %s1470_s8 = inlined_call_operand.vmem [shape: f32[1,128], index: 8, kind: input, shape index: {}]   ;;  %s1471_s9 = inlined_call_operand.hbm [shape: f32[16,128], index: 9, kind: output, shape index: {}]  }
   0x1   :  { %16 = vsyncpa [#allocation3 + $0x1], 0  ;;  %s1214_s30 = smov 0   ;;  %s1216_s10 = smov 0  }
   0x2   :  { %s1218_s11 = smov 0   ;;  %s1220_s12 = smov 0  }
   0x3 LB: > { %s1235_s13 = sadd.s32 4294967295, %s1159_s12   ;;  %s858_s14 = sadd.s32 4294967294, %s1159_s12   ;;  %s1159_s12 = sphi %s1220_s12, %s1477_s12   ;;  %s1155_s11 = sphi %s1218_s11, %s1476_s11   ;;  %s1151_s10 = sphi %s1216_s10, %s1475_s10   ;;  %s1147_s30 = sphi %s1214_s30, %s1474_s30  }
   0x4   : > { %s1239_s15 = sadd.s32 1, %s1159_s12   ;;  %s223_s16 = sadd.s32 1, %s1155_s11 }
   0x5   : > { %s220_s17 = ssub.s32 %s1159_s12, %s1239_s15  ;;  %p233_p0 = scmp.ne.s32.totalorder %s1155_s11, %s1151_s10 }
   0x6   : > { %p221_p1 = scmp.eq.s32.totalorder %s220_s17, 0  ;;  %p234_p2 = scmp.eq.s32.totalorder %s1235_s13, 1 }
   0x7   : > { %p239_p3 = scmp.ne.s32.totalorder %s1151_s10, %s1147_s30  ;;  %p240_p4 = scmp.eq.s32.totalorder %s858_s14, 1 }
   0x8   : > { %s1250_s18 = scalar_select %p221_p1, %s1155_s11, %s223_s16  }
   0x9   : > { %p1252_p5 = por %p234_p2, %p233_p0  ;;  %p1256_p6 = por %p240_p4, %p239_p3 }
   0xa   : > { %p861_p7 = scmp.ge.s32.totalorder %s1159_s12, 1  ;;  %p289_p8 = scmp.lt.s32.totalorder %s1159_s12, 3 }
   0xc   : > { %p290_p9 = pnand %p861_p7, %p289_p8 }
   0xd   : > { %v1061_v0 = vld [vmem:[%s1463_s1] sm:$0xff] (!%p290_p9)   ;;  %v1161_v1 = vmov (!%p290_p9), 0.0   ;;  %v1062_v2 = vld [vmem:[%s1463_s1 + $0x8] sm:$0xff] (!%p290_p9)   ;;  %vm1162_vm0 = vmmov (!%p290_p9), 0   ;;  %v1063_v3 = vld [vmem:[%s1463_s1 + $0x10] sm:$0xff] (!%p290_p9)   ;;  %p324_p10 = scmp.lt.s32.totalorder (!%p290_p9), %s1235_s13, 1 }
   0xe   : > { %293 = sbr.rel (%p290_p9) target bundleno = 954 (0x3ba), region = 56  ;;  %940 = vmatprep.subr.bf16.mxu0 (!%p290_p9), %v1161_v1  ;;  %960 = vmatprep.subr.bf16.mxu1 (!%p290_p9), %v1161_v1  ;;  %v1069_v4 = vld [vmem:[%s1465_s3] sm:$0xff] (!%p290_p9)   ;;  %v1064_v5 = vld [vmem:[%s1463_s1 + $0x18] sm:$0xff] (!%p290_p9)   ;;  %v1070_v6 = vld [vmem:[%s1465_s3 + $0x8] sm:$0xff] (!%p290_p9)   ;;  %s321_s27 = sand.u32 (!%p290_p9), 1, %s1151_s10  }
   0xf   : > { %941 = vmatpush3.bf16.msra.mxu0 (!%p290_p9), %v1061_v0  ;;  %956 = vmatprep.mubr.msk.bf16.mxu0 (!%p290_p9), %vm1162_vm0, %v1161_v1  ;;  %v1065_v7 = vld [vmem:[%s1463_s1 + $0x20] sm:$0xff] (!%p290_p9)   ;;  %v1071_v8 = vld [vmem:[%s1465_s3 + $0x10] sm:$0xff] (!%p290_p9)   ;;  %v1066_v9 = vld [vmem:[%s1463_s1 + $0x28] sm:$0xff] (!%p290_p9)   ;;  %s901_s29 = sshll.u32 (!%p290_p9), %s1235_s13, 7  ;;  %s786_s22 = scalar_lea.sflag (!%p290_p9), [#allocation3], %s321_s27 }
  0x10   : > { %942 = vmatprep.subr.bf16.mxu0 (!%p290_p9), %v1161_v1  ;;  %976 = vmatprep.mubr.msk.bf16.mxu1 (!%p290_p9), %vm1162_vm0, %v1161_v1  ;;  %v1072_v10 = vld [vmem:[%s1465_s3 + $0x18] sm:$0xff] (!%p290_p9)   ;;  %v1067_v11 = vld [vmem:[%s1463_s1 + $0x30] sm:$0xff] (!%p290_p9)   ;;  %v1073_v12 = vld [vmem:[%s1465_s3 + $0x20] sm:$0xff] (!%p290_p9)   ;;  %s1420_s21 = scalar_lea.hbm (!%p290_p9), %s1471_s9, %s901_s29 }
  0x11   : > { %961 = vmatpush3.bf16.msra.mxu1 (!%p290_p9), %v1069_v4  ;;  %v1068_v13 = vld [vmem:[%s1463_s1 + $0x38] sm:$0xff] (!%p290_p9)   ;;  %v1074_v14 = vld [vmem:[%s1465_s3 + $0x28] sm:$0xff] (!%p290_p9)   ;;  %v1075_v16 = vld [vmem:[%s1465_s3 + $0x30] sm:$0xff] (!%p290_p9)  }
  0x12   : > { %962 = vmatprep.subr.bf16.mxu1 (!%p290_p9), %v1161_v1  ;;  %v1076_v17 = vld [vmem:[%s1465_s3 + $0x38] sm:$0xff] (!%p290_p9)   ;;  %v1077_v18 = vld [vmem:[%s1467_s5] sm:$0xff] (!%p290_p9)   ;;  %v1078_v19 = vld [vmem:[%s1467_s5 + $0x8] sm:$0xff] (!%p290_p9)  }
  0x13   : > { %943 = vmatpush3.bf16.msra.mxu0 (!%p290_p9), %v1062_v2  ;;  %v1079_v20 = vld [vmem:[%s1467_s5 + $0x10] sm:$0xff] (!%p290_p9)   ;;  %v1080_v21 = vld [vmem:[%s1467_s5 + $0x18] sm:$0xff] (!%p290_p9)   ;;  %v1081_v22 = vld [vmem:[%s1467_s5 + $0x20] sm:$0xff] (!%p290_p9)  }
  0x14   : > { %944 = vmatprep.subr.bf16.mxu0 (!%p290_p9), %v1161_v1  ;;  %v1082_v23 = vld [vmem:[%s1467_s5 + $0x28] sm:$0xff] (!%p290_p9)   ;;  %v1083_v24 = vld [vmem:[%s1467_s5 + $0x30] sm:$0xff] (!%p290_p9)   ;;  %v864_v25 = vld [vmem:[%s1464_s2] ss:$0 sm:$0xff] (!%p290_p9) }
  0x15   : > { %s325_s16 = scalar_select %p324_p10, %s1235_s13, 1  ;;  %963 = vmatpush3.bf16.msra.mxu1 %v1070_v6  ;;  %v1084_v33 = vld [vmem:[%s1467_s5 + $0x38] sm:$0xff]   ;;  %v1085_v34 = vld [vmem:[%s1469_s7] sm:$0xff]   ;;  %v1086_v35 = vld [vmem:[%s1469_s7 + $0x8] sm:$0xff]  }
  0x16   : > { %964 = vmatprep.subr.bf16.mxu1 %v1161_v1  ;;  %v1087_v36 = vld [vmem:[%s1469_s7 + $0x10] sm:$0xff]   ;;  %v1088_v37 = vld [vmem:[%s1469_s7 + $0x18] sm:$0xff]   ;;  %v1089_v38 = vld [vmem:[%s1469_s7 + $0x20] sm:$0xff]   ;;  %s1163_s13 = smov [#allocation2]  }
  0x17   : > { %945 = vmatpush3.bf16.msra.mxu0 %v1063_v3  ;;  %s863_s24 = sshll.u32 %s325_s16, 2  ;;  %v1090_v39 = vld [vmem:[%s1469_s7 + $0x28] sm:$0xff]   ;;  %v873_v40 = vld [vmem:[%s1466_s4] ss:$0 sm:$0xff]  ;;  %v1091_v47 = vld [vmem:[%s1469_s7 + $0x30] sm:$0xff]   ;;  %s1101_s25 = sshll.u32 %s1163_s13, 4  ;;  %s1102_s25 = int_to_ptr.vmem [resolvable:$false] %s1101_s25 }
  0x18   : > { %946 = vmatprep.subr.bf16.mxu0 %v1161_v1  ;;  %s327_s28 = scalar_lea.vmem %s1462_s0, %s863_s24  ;;  %v1092_v48 = vld [vmem:[%s1469_s7 + $0x38] sm:$0xff]   ;;  %v882_v49 = vld [vmem:[%s1468_s6] ss:$0 sm:$0xff]  ;;  %s1103_s26 = scalar_lea.vmem %s1102_s25, 256 }
  0x19   : > { %965 = vmatpush3.bf16.msra.mxu1 %v1071_v8  ;;  %v329_v15 = vld [vmem:[%s327_s28] sm:$0xf]  ;;  %s862_s28 = sshll.u32 %s321_s27, 3 }
  0x1a   : > { %966 = vmatprep.subr.bf16.mxu1 %v1161_v1  ;;  %v891_v57 = vld [vmem:[%s1470_s8] ss:$0 sm:$0xff]  ;;  %s323_s14 = scalar_lea.vmem [#allocation2], %s862_s28 }
  0x1b   : > { %947 = vmatpush3.bf16.msra.mxu0 %v1064_v5  ;;  %s799_s16 = sshll.u32 %s323_s14, 4  ;;  %s1422_s16 = int_to_ptr.vmem [resolvable:$true] %s799_s16 }
  0x1c   : > { %948 = vmatprep.subr.bf16.mxu0 %v1161_v1  ;;  %s1097_s23 = scalar_lea.vmem %s1422_s16, 128  ;;  %p1104_p0 = scmp.lt.s32.totalorder %s1422_s16, %s1102_s25 }
  0x1d   : > { %967 = vmatpush3.bf16.msra.mxu1 %v1072_v10  ;;  %p1098_p11 = scmp.ne.s32.totalorder %s1422_s16, %s1097_s23  ;;  %p1105_p1 = scmp.lt.s32.totalorder %s1103_s26, %s1097_s23 }
  0x1e   : > { %968 = vmatprep.subr.bf16.mxu1 %v1161_v1 }
  0x1f   : > { %949 = vmatpush3.bf16.msra.mxu0 %v1065_v7  ;;  %p1099_p12 = pnand %p1098_p11, %p1252_p5  ;;  %p1106_p2 = por %p1105_p1, %p1104_p0 }
  0x20   : > { %950 = vmatprep.subr.bf16.mxu0 %v1161_v1 }
  0x21   : > { %969 = vmatpush3.bf16.msra.mxu1 %v1073_v12  ;;  %p1100_p13 = pneg %p1099_p12 }
  0x22   : > { %970 = vmatprep.subr.bf16.mxu1 %v1161_v1 }
  0x23   : > { %951 = vmatpush3.bf16.msra.mxu0 %v1066_v9  ;;  %p1107_p3 = pnand %p1106_p2, %p1100_p13 }
  0x24   : > { %952 = vmatprep.subr.bf16.mxu0 %v1161_v1 }
  0x25   : > { %971 = vmatpush3.bf16.msra.mxu1 %v1074_v14 }
  0x26   : > { %972 = vmatprep.subr.bf16.mxu1 %v1161_v1 }
  0x27   : > { %953 = vmatpush3.bf16.msra.mxu0 %v1067_v11 }
  0x28   : > { %954 = vmatprep.subr.bf16.mxu0 %v1161_v1 }
  0x29   : > { %973 = vmatpush3.bf16.msra.mxu1 %v1075_v16 }
  0x2a   : > { %974 = vmatprep.subr.bf16.mxu1 %v1161_v1 }
  0x2b   : > { %955 = vmatpush3.bf16.msra.mxu0 %v1068_v13 }
  0x2c   : > { %980 = vmatprep.subr.bf16.mxu0 %v1161_v1 }
  0x2d   : > { %975 = vmatpush3.bf16.msra.mxu1 %v1076_v17 }
  0x2e   : > { %957 = vmatmul.mubr.bf16.vlgmr.msra.gmra.mrb[0].mxu0 %v329_v15  ;;  %1000 = vmatprep.subr.bf16.mxu1 %v1161_v1 }
  0x2f   : > { %996 = vmatprep.mubr.msk.bf16.mxu0 %vm1162_vm0, %v1161_v1  ;;  %981 = vmatpush3.bf16.msra.mxu0 %v1077_v18 }
  0x30   : > { %982 = vmatprep.subr.bf16.mxu0 %v1161_v1 }
  0x33   : > { %983 = vmatpush3.bf16.msra.mxu0 %v1078_v19 }
  0x34   : > { %984 = vmatprep.subr.bf16.mxu0 %v1161_v1 }
  0x37   : > { %985 = vmatpush3.bf16.msra.mxu0 %v1079_v20 }
  0x38   : > { %986 = vmatprep.subr.bf16.mxu0 %v1161_v1 }
  0x3b   : > { %987 = vmatpush3.bf16.msra.mxu0 %v1080_v21 }
  0x3c   : > { %988 = vmatprep.subr.bf16.mxu0 %v1161_v1 }
  0x3f   : > { %989 = vmatpush3.bf16.msra.mxu0 %v1081_v22 }
  0x40   : > { %990 = vmatprep.subr.bf16.mxu0 %v1161_v1 }
  0x43   : > { %991 = vmatpush3.bf16.msra.mxu0 %v1082_v23 }
  0x44   : > { %992 = vmatprep.subr.bf16.mxu0 %v1161_v1 }
  0x47   : > { %993 = vmatpush3.bf16.msra.mxu0 %v1083_v24 }
  0x48   : > { %994 = vmatprep.subr.bf16.mxu0 %v1161_v1 }
  0x4b   : > { %995 = vmatpush3.bf16.msra.mxu0 %v1084_v33 }
 0x101   : > { %v435_v26 = vpop.f32.mrb[0].mxu0 }
 0x102   : > { %v436_v27 = vadd.f32 %v864_v25, %v435_v26  ;;  %v958_v28 = vpop.f32.mrb[1].mxu0 }
 0x103   : > { %v438_v29 = vpop.f32.mrb[2].mxu0 }
 0x104   : > { %v441_v30 = vmax.f32 %v436_v27, 0.0  ;;  %v959_v31 = vpop.f32.mrb[3].mxu0 }
 0x106   : > { %v442_v32 = vpack.c.bf16 %v441_v30, %v441_v30 }
 0x108   : > { %977 = vmatmul.mubr.bf16.vlgmr.msra.gmra.mrb[0].mxu1 %v442_v32 }
 0x109   : > { %1016 = vmatprep.mubr.msk.bf16.mxu1 %vm1162_vm0, %v1161_v1  ;;  %1001 = vmatpush3.bf16.msra.mxu1 %v1085_v34 }
 0x10a   : > { %1002 = vmatprep.subr.bf16.mxu1 %v1161_v1 }
 0x10d   : > { %1003 = vmatpush3.bf16.msra.mxu1 %v1086_v35 }
 0x10e   : > { %1004 = vmatprep.subr.bf16.mxu1 %v1161_v1 }
 0x111   : > { %1005 = vmatpush3.bf16.msra.mxu1 %v1087_v36 }
 0x112   : > { %1006 = vmatprep.subr.bf16.mxu1 %v1161_v1 }
 0x115   : > { %1007 = vmatpush3.bf16.msra.mxu1 %v1088_v37 }
 0x116   : > { %1008 = vmatprep.subr.bf16.mxu1 %v1161_v1 }
 0x119   : > { %1009 = vmatpush3.bf16.msra.mxu1 %v1089_v38 }
 0x11a   : > { %1010 = vmatprep.subr.bf16.mxu1 %v1161_v1 }
 0x11d   : > { %1011 = vmatpush3.bf16.msra.mxu1 %v1090_v39 }
 0x11e   : > { %1012 = vmatprep.subr.bf16.mxu1 %v1161_v1 }
 0x121   : > { %1013 = vmatpush3.bf16.msra.mxu1 %v1091_v47 }
 0x122   : > { %1014 = vmatprep.subr.bf16.mxu1 %v1161_v1 }
 0x125   : > { %1015 = vmatpush3.bf16.msra.mxu1 %v1092_v48 }
 0x1db   : > { %v548_v41 = vpop.f32.mrb[0].mxu1 }
 0x1dc   : > { %v549_v42 = vadd.f32 %v873_v40, %v548_v41  ;;  %v978_v43 = vpop.f32.mrb[1].mxu1 }
 0x1dd   : > { %v551_v44 = vpop.f32.mrb[2].mxu1 }
 0x1de   : > { %v554_v45 = vpack.c.bf16 %v549_v42, %v549_v42  ;;  %v979_v46 = vpop.f32.mrb[3].mxu1 }
 0x1e0   : > { %997 = vmatmul.mubr.bf16.vlgmr.msra.gmra.mrb[4].mxu0 %v554_v45 }
 0x2b3   : > { %v660_v50 = vpop.f32.mrb[4].mxu0 }
 0x2b4   : > { %v661_v51 = vadd.f32 %v882_v49, %v660_v50  ;;  %v998_v52 = vpop.f32.mrb[5].mxu0 }
 0x2b5   : > { %v663_v53 = vpop.f32.mrb[6].mxu0 }
 0x2b6   : > { %v666_v54 = vmax.f32 %v661_v51, 0.0  ;;  %v999_v55 = vpop.f32.mrb[7].mxu0 }
 0x2b8   : > { %v667_v56 = vpack.c.bf16 %v666_v54, %v666_v54 }
 0x2ba   : > { %1017 = vmatmul.mubr.bf16.vlgmr.msra.gmra.mrb[4].mxu1 %v667_v56 }
 0x38d   : > { %v773_v58 = vpop.f32.mrb[4].mxu1 }
 0x38e   : > { %v774_v59 = vadd.f32 %v891_v57, %v773_v58  ;;  %v1018_v60 = vpop.f32.mrb[5].mxu1 }
 0x38f   : > { %v776_v61 = vpop.f32.mrb[6].mxu1 }
 0x390   : > { %v779_v62 = vsub.f32 0.0, %v774_v59  ;;  %v1019_v63 = vpop.f32.mrb[7].mxu1 }
 0x392   : > { %v780_v0 = vmul.f32 1.442695, %v779_v62 }
 0x394   : > { %1093 = vpow2.f32 %v780_v0 }
 0x39e   : > { %v1094_v1 = vpop.eup %1093 }
 0x39f   : > { %v782_v2 = vadd.f32 1.0, %v1094_v1 }
 0x3a1   : > { %1095 = vrcp.f32 %v782_v2 }
 0x3ab   : > { %v1096_v3 = vpop.eup %1095 }
 0x3ac   : > { %784 = vst [vmem:[%s323_s14] sm:$0xff] %v1096_v3 }
 0x3ad   : > { %1110 = shalt.err (!%p1107_p3)
}
 0x3ae   : > { %s1111_s27 = scalar_lea.hbm %s1420_s21, 128  ;;  %s1115_s14 = scalar_lea.hbm %s1471_s9, 256 }
 0x3af   : > { %p1112_p4 = scmp.ne.s32.totalorder %s1420_s21, %s1111_s27  ;;  %p1116_p9 = scmp.lt.u32.totalorder %s1420_s21, %s1471_s9 }
 0x3b0   : > { %p1117_p10 = scmp.lt.u32.totalorder %s1115_s14, %s1111_s27  ;;  %p1119_p12 = scmp.lt.u32.totalorder %s1111_s27, %s1420_s21 }
 0x3b1   : > { %p1113_p7 = pnand %p1112_p4, %p1252_p5 }
 0x3b2   : > { %p1118_p11 = por %p1117_p10, %p1116_p9 }
 0x3b3   : > { %p1114_p8 = pneg %p1113_p7 }
 0x3b4   : > { %p1120_p13 = por %p1119_p12, %p1118_p11 }
 0x3b6   : > { %p1121_p0 = pnand %p1120_p13, %p1114_p8 }
 0x3b8   : > { %1124 = shalt.err (!%p1121_p0)
}
 0x3b9   : > { %1020 = dma.vmem_to_hbm [thread:$0]  (%p1252_p5), %s1422_s16, 128, %s1420_s21, %s786_s22  }
 0x3ba PF: > { %p1026_p1 = scmp.ge.s32.totalorder %s1159_s12, 2  ;;  %s811_s23 = sand.u32 1, %s1147_s30  }
 0x3bb   : > { %s812_s13 = scalar_lea.sflag [#allocation3], %s811_s23 }
 0x3bc   : > { %p1023_p2 = pnand %p1026_p1, %p1256_p6 }
 0x3be   : > { %1142 = dma.done.wait (!%p1023_p2), %s812_s13, 128  }
 0x3bf   : > { %1144 = vsyncadd (!%p1023_p2), %s812_s13, 4294967168  ;;  %p19_p3 = scmp.ge.s32.totalorder %s1239_s15, 4   ;;  %s1474_s30 = smov %s1151_s10 }
 0x3c0   : > { %s1475_s10 = smov %s1155_s11  ;;  %s1476_s11 = smov %s1250_s18 }
 0x3c1   : > { %s1477_s12 = smov %s1239_s15  ;;  %21 = sbr.rel (!%p19_p3) target bundleno = 3 (0x3), region = 91 }
 0x3c8   :  { %817 = vsyncpa [#allocation3], 1 }
 0x3c9   :  { %819 = vsyncpa [#allocation3 + $0x1], 1 }

</bundles_post_ra>
